<compile_context>
chip_gen: v7x
topology: tpu7x:2x2x1
jax: 0.10.0
libtpu: 0.0.40
codegen_flags: <defaults>
</compile_context>

<pallas_src>
import functools
import math

import jax
import jax.numpy as jnp
from jax.experimental import pallas as pl
from jax.experimental.pallas import tpu as pltpu

LANE = 128      # lane width / feature padding unit for hidden/output dims
SUBLANE = 16    # bf16 packs 16 rows per vreg sublane-wise


def _round_up(x, m):
    return (x + m - 1) // m * m


def _cdiv(a, b):
    return -(-a // b)


# --------------------------------------------------------------------------
# Parameter init (torch.nn.Linear default: U[-1/sqrt(fan_in), +1/sqrt(fan_in)])
# --------------------------------------------------------------------------
def init_cond_mlp_params(key, in_dim, hidden_dim, out_dim, cond_dim,
                         dtype=jnp.float32):
    dims_in = [in_dim] + list(hidden_dim)        # per-layer input dim (pre-concat)
    dims_out = list(hidden_dim) + [out_dim]      # per-layer output dim
    params = []
    for d_in, d_out in zip(dims_in, dims_out):
        fan_in = d_in + cond_dim
        bound = 1.0 / math.sqrt(fan_in)
        key, kw, kb = jax.random.split(key, 3)
        # w is the transposed torch weight: (fan_in, d_out)
        w = jax.random.uniform(kw, (fan_in, d_out), dtype, -bound, bound)
        b = jax.random.uniform(kb, (d_out,), dtype, -bound, bound)
        params.append({"w": w, "b": b})
    return params


# --------------------------------------------------------------------------
# Pack params for the fused kernel.
#   wx0 : (in_dim, d_max)                 first layer, natural (narrow) K
#   wxr : (n_layers-1, d_max, d_max)      remaining layers, lane-padded
#   wc  : (cond_dim, n_layers * d_max)    all cond weights, concatenated
#   b   : (1, n_layers * d_max)           all biases, f32
# --------------------------------------------------------------------------
def pack_cond_mlp_params(params, in_dim, hidden_dim, out_dim, cond_dim,
                         compute_dtype=jnp.bfloat16, act="relu"):
    if act != "relu":
        # TODO(synk): only ReLU is supported (padding exactness needs act(0)=0).
        raise NotImplementedError("CondMLP Pallas kernel only implements ReLU.")
    hidden_dim = list(hidden_dim)
    assert len(hidden_dim) >= 1, "module requires at least one hidden layer"

    dims_in = [in_dim] + hidden_dim
    dims_out = hidden_dim + [out_dim]
    n_layers = len(params)
    d_max = _round_up(max(hidden_dim + [out_dim]), LANE)   # hidden/output width

    wx0 = jnp.zeros((in_dim, d_max), compute_dtype)
    wx0 = wx0.at[:, :dims_out[0]].set(params[0]["w"][:in_dim].astype(compute_dtype))

    n_rest = max(n_layers - 1, 1)
    wxr = jnp.zeros((n_rest, d_max, d_max), compute_dtype)
    wc = jnp.zeros((cond_dim, n_layers * d_max), compute_dtype)
    b = jnp.zeros((1, n_layers * d_max), jnp.float32)

    for l, (p, d_in, d_out) in enumerate(zip(params, dims_in, dims_out)):
        w = p["w"]                                   # (d_in + cond_dim, d_out)
        if l > 0:
            wxr = wxr.at[l - 1, :d_in, :d_out].set(w[:d_in].astype(compute_dtype))
        wc = wc.at[:, l * d_max:l * d_max + d_out].set(w[d_in:].astype(compute_dtype))
        b = b.at[0, l * d_max:l * d_max + d_out].set(p["b"].astype(jnp.float32))

    return {
        "wx0": wx0, "wxr": wxr, "wc": wc, "b": b,
        "n_layers": n_layers, "d_max": d_max,
        "in_dim": in_dim, "cond_dim": cond_dim, "out_dim": out_dim,
        "compute_dtype": compute_dtype,
    }


# --------------------------------------------------------------------------
# Fused kernel: all layers in one invocation, activations never leave VMEM.
# --------------------------------------------------------------------------
def _cond_mlp_kernel(x_ref, c_ref, wx0_ref, wxr_ref, wc_ref, b_ref, o_ref, *,
                     n_layers, d_max, compute_dtype):
    # cond contribution of EVERY layer + bias, folded into one effective bias
    # with a single MXU push: [TB, n_layers * d_max], f32 accumulation.
    # (If depth grows large, compute the per-layer cond term inside the loop
    #  instead of materializing the full b_eff slab.)
    cond = c_ref[...].astype(compute_dtype)
    b_eff = jnp.dot(cond, wc_ref[...],
                    preferred_element_type=jnp.float32) + b_ref[...]

    # Layer 0: natural (narrow) K = in_dim, cast to bf16 inside the kernel.
    h = x_ref[...].astype(compute_dtype)
    y = jnp.dot(h, wx0_ref[...], preferred_element_type=jnp.float32)
    y = y + b_eff[:, 0:d_max]

    # Layers 1..n-1: K = d_max, static unroll. ReLU in f32 (v5e-safe), then
    # re-quantize to bf16 for the MXU.
    for l in range(1, n_layers):
        h = jnp.maximum(y, 0.0).astype(compute_dtype)
        y = jnp.dot(h, wxr_ref[l - 1], preferred_element_type=jnp.float32)
        y = y + b_eff[:, l * d_max:(l + 1) * d_max]   # static, lane-aligned slice

    o_ref[...] = y.astype(o_ref.dtype)                # lane-dense (d_max) store


# --------------------------------------------------------------------------
# Batch tile selection: big tiles (amortize ~0.35us/step), >=2 tiles whenever
# the batch allows (v7x megacore), small padding remainder.
# --------------------------------------------------------------------------
def _pick_batch_tile(batch, cap=1024):
    b16 = _round_up(batch, SUBLANE)
    if b16 <= 2 * SUBLANE:            # tiny batch: one tile, splitting = pure overhead
        return b16
    n_tiles = max(2, _cdiv(b16, cap))  # >=2 so both v7x TensorCores get work
    return _round_up(_cdiv(b16, n_tiles), SUBLANE)


# --------------------------------------------------------------------------
# Wrapper: one pallas_call total; only row-padding of x/cond (no feature pad).
# --------------------------------------------------------------------------
def cond_mlp_forward(packed, x, cond, *, batch_tile=None, out_dtype=jnp.bfloat16):
    n_layers = packed["n_layers"]
    d_max = packed["d_max"]
    in_dim = packed["in_dim"]
    cond_dim = packed["cond_dim"]
    cdt = packed["compute_dtype"]
    n_rest = packed["wxr"].shape[0]

    batch = x.shape[0]
    assert x.shape == (batch, in_dim)
    assert cond.shape == (batch, cond_dim)

    if batch_tile is None:
        batch_tile = _pick_batch_tile(batch)
    batch_tile = _round_up(batch_tile, SUBLANE)
    grid = _cdiv(batch, batch_tile)
    b_pad = grid * batch_tile
    if b_pad != batch:
        x = jnp.pad(x, ((0, b_pad - batch), (0, 0)))
        cond = jnp.pad(cond, ((0, b_pad - batch), (0, 0)))

    # Guardrail: weights stay VMEM-resident (constant index_map, default
    # double-buffered). v7x only has 64 MiB VMEM / 32 MiB default scoped.
    w_bytes = ((packed["wx0"].size + packed["wxr"].size + packed["wc"].size) * 2
               + packed["b"].size * 4)
    if 2 * w_bytes > 20 * 1024 * 1024:
        # TODO(synk): stream weights per layer (feature-tiling grid axis)
        # instead of keeping all layers VMEM-resident.
        raise NotImplementedError("Resident weights too large for v7x VMEM.")

    flops = 2 * b_pad * (in_dim * d_max
                         + (n_layers - 1) * d_max * d_max
                         + cond_dim * n_layers * d_max)
    bytes_accessed = (x.size * x.dtype.itemsize
                      + cond.size * cond.dtype.itemsize
                      + w_bytes
                      + b_pad * d_max * jnp.dtype(out_dtype).itemsize)

    kernel = functools.partial(_cond_mlp_kernel, n_layers=n_layers,
                               d_max=d_max, compute_dtype=cdt)

    out = pl.pallas_call(
        kernel,
        out_shape=jax.ShapeDtypeStruct((b_pad, d_max), out_dtype),
        grid_spec=pltpu.PrefetchScalarGridSpec(
            num_scalar_prefetch=0,
            grid=(grid,),
            in_specs=[
                # activations / cond: tiled over batch, natural feature width
                pl.BlockSpec((batch_tile, in_dim), lambda i: (i, 0)),
                pl.BlockSpec((batch_tile, cond_dim), lambda i: (i, 0)),
                # weights / bias: constant index_map -> stay VMEM-resident
                pl.BlockSpec((in_dim, d_max), lambda i: (0, 0)),
                pl.BlockSpec((n_rest, d_max, d_max), lambda i: (0, 0, 0)),
                pl.BlockSpec((cond_dim, n_layers * d_max), lambda i: (0, 0)),
                pl.BlockSpec((1, n_layers * d_max), lambda i: (0, 0)),
            ],
            out_specs=pl.BlockSpec((batch_tile, d_max), lambda i: (i, 0)),
        ),
        compiler_params=pltpu.CompilerParams(
            dimension_semantics=("parallel",),      # shard batch across TCs (v7x)
            vmem_limit_bytes=32 * 1024 * 1024),
        cost_estimate=pl.CostEstimate(flops=int(flops), transcendentals=0,
                                      bytes_accessed=int(bytes_accessed)),
    )(x, cond, packed["wx0"], packed["wxr"], packed["wc"], packed["b"])

    return out[:batch, :packed["out_dim"]]


if __name__ == "__main__":
    # Small shapes consistent with the module's forward.
    batch = 8
    in_dim = 16
    cond_dim = 8
    hidden_dim = [32, 32]
    out_dim = 16

    key = jax.random.PRNGKey(0)
    kp, kx, kc = jax.random.split(key, 3)

    params = init_cond_mlp_params(kp, in_dim, hidden_dim, out_dim, cond_dim)
    packed = pack_cond_mlp_params(params, in_dim, hidden_dim, out_dim, cond_dim,
                                  compute_dtype=jnp.bfloat16, act="relu")

    x = jax.random.normal(kx, (batch, in_dim), jnp.float32)
    cond = jax.random.normal(kc, (batch, cond_dim), jnp.float32)

    out = cond_mlp_forward(packed, x, cond)
    out = jax.block_until_ready(out)

    # Pure-JAX reference: exact torch semantics (concat + Linear + ReLU),
    # using the same bf16 matmul inputs / f32 accumulation as the kernel.
    def ref_forward(params, x, cond, compute_dtype=jnp.bfloat16):
        h = x
        for l, p in enumerate(params):
            inp = jnp.concatenate([h, cond], axis=-1).astype(compute_dtype)
            y = jnp.dot(inp, p["w"].astype(compute_dtype),
                        preferred_element_type=jnp.float32)
            y = y + p["b"].astype(jnp.float32)
            if l < len(params) - 1:
                y = jnp.maximum(y, 0.0)
            h = y
        return h

    ref = ref_forward(params, x, cond)
    out_f32 = out.astype(jnp.float32)
    assert out.shape == (batch, out_dim)
    assert jnp.allclose(out_f32, ref, atol=2e-2, rtol=2e-2), (
        float(jnp.max(jnp.abs(out_f32 - ref))))

    print("KERNEL_OK")
</pallas_src>

<mosaic_0001>
module attributes {stable_mosaic.version = 11 : i64} {
  func.func @_cond_mlp_kernel(%arg0: i32, %arg1: memref<16x16xf32, #tpu.memory_space<vmem>>, %arg2: memref<16x8xf32, #tpu.memory_space<vmem>>, %arg3: memref<16x128xbf16, #tpu.memory_space<vmem>>, %arg4: memref<2x128x128xbf16, #tpu.memory_space<vmem>>, %arg5: memref<8x384xbf16, #tpu.memory_space<vmem>>, %arg6: memref<1x384xf32, #tpu.memory_space<vmem>>, %arg7: memref<16x128xbf16, #tpu.memory_space<vmem>>) attributes {dimension_semantics = [#tpu.dimension_semantics<parallel>], iteration_bounds = array<i64: 1>, scalar_prefetch = 0 : i64, scratch_operands = 0 : i64, tpu.core_type = #tpu.core_type<tc>, window_params = [{transform_indices = @transform_0, window_bounds = array<i64: 16, 16>}, {transform_indices = @transform_1, window_bounds = array<i64: 16, 8>}, {pipeline_mode = #tpu.pipeline_mode<synchronous>, transform_indices = @transform_2, window_bounds = array<i64: 16, 128>}, {pipeline_mode = #tpu.pipeline_mode<synchronous>, transform_indices = @transform_3, window_bounds = array<i64: 2, 128, 128>}, {pipeline_mode = #tpu.pipeline_mode<synchronous>, transform_indices = @transform_4, window_bounds = array<i64: 8, 384>}, {pipeline_mode = #tpu.pipeline_mode<synchronous>, transform_indices = @transform_5, window_bounds = array<i64: 1, 384>}, {transform_indices = @transform_6, window_bounds = array<i64: 16, 128>}]} {
    %c0 = arith.constant 0 : index
    %c0_0 = arith.constant 0 : index
    %0 = vector.load %arg2[%c0, %c0_0] : memref<16x8xf32, #tpu.memory_space<vmem>>, vector<16x8xf32>
    %1 = arith.truncf %0 : vector<16x8xf32> to vector<16x8xbf16>
    %c0_1 = arith.constant 0 : index
    %c0_2 = arith.constant 0 : index
    %2 = vector.load %arg5[%c0_1, %c0_2] : memref<8x384xbf16, #tpu.memory_space<vmem>>, vector<8x384xbf16>
    %cst = arith.constant dense<0.000000e+00> : vector<16x384xf32>
    %3 = tpu.matmul %1, %2, %cst {dimension_numbers = #tpu.dot_dimension_numbers<[1], [0], [0], [1], [0, 0, 1, 1], [], []>} : vector<16x8xbf16>, vector<8x384xbf16>, vector<16x384xf32> -> vector<16x384xf32>
    %c0_3 = arith.constant 0 : index
    %c0_4 = arith.constant 0 : index
    %4 = vector.load %arg6[%c0_3, %c0_4] : memref<1x384xf32, #tpu.memory_space<vmem>>, vector<1x384xf32>
    %5 = vector.broadcast %4 : vector<1x384xf32> to vector<16x384xf32>
    %6 = arith.addf %3, %5 : vector<16x384xf32>
    %c0_5 = arith.constant 0 : index
    %c0_6 = arith.constant 0 : index
    %7 = vector.load %arg1[%c0_5, %c0_6] : memref<16x16xf32, #tpu.memory_space<vmem>>, vector<16x16xf32>
    %8 = arith.truncf %7 : vector<16x16xf32> to vector<16x16xbf16>
    %c0_7 = arith.constant 0 : index
    %c0_8 = arith.constant 0 : index
    %9 = vector.load %arg3[%c0_7, %c0_8] : memref<16x128xbf16, #tpu.memory_space<vmem>>, vector<16x128xbf16>
    %cst_9 = arith.constant dense<0.000000e+00> : vector<16x128xf32>
    %10 = tpu.matmul %8, %9, %cst_9 {dimension_numbers = #tpu.dot_dimension_numbers<[1], [0], [0], [1], [0, 0, 1, 1], [], []>} : vector<16x16xbf16>, vector<16x128xbf16>, vector<16x128xf32> -> vector<16x128xf32>
    %11 = vector.extract_strided_slice %6 {offsets = [0, 0], sizes = [16, 128], strides = [1, 1]} : vector<16x384xf32> to vector<16x128xf32>
    %12 = arith.addf %10, %11 : vector<16x128xf32>
    %cst_10 = arith.constant 0.000000e+00 : f32
    %13 = vector.broadcast %cst_10 : f32 to vector<16x128xf32>
    %14 = arith.maximumf %12, %13 : vector<16x128xf32>
    %15 = arith.truncf %14 : vector<16x128xf32> to vector<16x128xbf16>
    %c0_11 = arith.constant 0 : index
    %c0_12 = arith.constant 0 : index
    %c0_13 = arith.constant 0 : index
    %16 = vector.load %arg4[%c0_11, %c0_12, %c0_13] : memref<2x128x128xbf16, #tpu.memory_space<vmem>>, vector<1x128x128xbf16>
    %17 = vector.shape_cast %16 : vector<1x128x128xbf16> to vector<128x128xbf16>
    %cst_14 = arith.constant dense<0.000000e+00> : vector<16x128xf32>
    %18 = tpu.matmul %15, %17, %cst_14 {dimension_numbers = #tpu.dot_dimension_numbers<[1], [0], [0], [1], [0, 0, 1, 1], [], []>} : vector<16x128xbf16>, vector<128x128xbf16>, vector<16x128xf32> -> vector<16x128xf32>
    %19 = vector.extract_strided_slice %6 {offsets = [0, 128], sizes = [16, 128], strides = [1, 1]} : vector<16x384xf32> to vector<16x128xf32>
    %20 = arith.addf %18, %19 : vector<16x128xf32>
    %cst_15 = arith.constant 0.000000e+00 : f32
    %21 = vector.broadcast %cst_15 : f32 to vector<16x128xf32>
    %22 = arith.maximumf %20, %21 : vector<16x128xf32>
    %23 = arith.truncf %22 : vector<16x128xf32> to vector<16x128xbf16>
    %c1 = arith.constant 1 : index
    %c0_16 = arith.constant 0 : index
    %c0_17 = arith.constant 0 : index
    %24 = vector.load %arg4[%c1, %c0_16, %c0_17] : memref<2x128x128xbf16, #tpu.memory_space<vmem>>, vector<1x128x128xbf16>
    %25 = vector.shape_cast %24 : vector<1x128x128xbf16> to vector<128x128xbf16>
    %cst_18 = arith.constant dense<0.000000e+00> : vector<16x128xf32>
    %26 = tpu.matmul %23, %25, %cst_18 {dimension_numbers = #tpu.dot_dimension_numbers<[1], [0], [0], [1], [0, 0, 1, 1], [], []>} : vector<16x128xbf16>, vector<128x128xbf16>, vector<16x128xf32> -> vector<16x128xf32>
    %27 = vector.extract_strided_slice %6 {offsets = [0, 256], sizes = [16, 128], strides = [1, 1]} : vector<16x384xf32> to vector<16x128xf32>
    %28 = arith.addf %26, %27 : vector<16x128xf32>
    %29 = arith.truncf %28 : vector<16x128xf32> to vector<16x128xbf16>
    %c0_19 = arith.constant 0 : index
    %c0_20 = arith.constant 0 : index
    %30 = vector.load %arg7[%c0_19, %c0_20] : memref<16x128xbf16, #tpu.memory_space<vmem>>, vector<16x128xbf16>
    tpu.vector_store %arg7[%c0_19, %c0_20], %29 {strides = array<i32>} : memref<16x128xbf16, #tpu.memory_space<vmem>>, vector<16x128xbf16>,
    return
  }
  func.func @transform_0(%arg0: i32) -> (i32, i32) {
    %c0_i32 = arith.constant 0 : i32
    %c0_i32_0 = arith.constant 0 : i32
    return %arg0, %c0_i32 : i32, i32
  }
  func.func @transform_1(%arg0: i32) -> (i32, i32) {
    %c0_i32 = arith.constant 0 : i32
    %c0_i32_0 = arith.constant 0 : i32
    return %arg0, %c0_i32 : i32, i32
  }
  func.func @transform_2(%arg0: i32) -> (i32, i32) {
    %c0_i32 = arith.constant 0 : i32
    %c0_i32_0 = arith.constant 0 : i32
    %c0_i32_1 = arith.constant 0 : i32
    return %c0_i32, %c0_i32_0 : i32, i32
  }
  func.func @transform_3(%arg0: i32) -> (i32, i32, i32) {
    %c0_i32 = arith.constant 0 : i32
    %c0_i32_0 = arith.constant 0 : i32
    %c0_i32_1 = arith.constant 0 : i32
    %c0_i32_2 = arith.constant 0 : i32
    return %c0_i32, %c0_i32_0, %c0_i32_1 : i32, i32, i32
  }
  func.func @transform_4(%arg0: i32) -> (i32, i32) {
    %c0_i32 = arith.constant 0 : i32
    %c0_i32_0 = arith.constant 0 : i32
    %c0_i32_1 = arith.constant 0 : i32
    return %c0_i32, %c0_i32_0 : i32, i32
  }
  func.func @transform_5(%arg0: i32) -> (i32, i32) {
    %c0_i32 = arith.constant 0 : i32
    %c0_i32_0 = arith.constant 0 : i32
    %c0_i32_1 = arith.constant 0 : i32
    return %c0_i32, %c0_i32_0 : i32, i32
  }
  func.func @transform_6(%arg0: i32) -> (i32, i32) {
    %c0_i32 = arith.constant 0 : i32
    %c0_i32_0 = arith.constant 0 : i32
    return %arg0, %c0_i32 : i32, i32
  }
}

</mosaic_0001>

<bundles_post_ra>
// kernel: tpu_custom_call.1
= control target key start
LH: loop header
LB: loop body
LE: loop exit
PB: predicated region body
PF: predicated region fallthrough
CT: control target
= control target key end

     0   :  { %11 = vsyncpa [#allocation3], 0  ;;  %s835_s0 = inlined_call_operand.vmem [shape: f32[16,16], index: 0, kind: input, shape index: {}]   ;;  %s836_s1 = inlined_call_operand.vmem [shape: f32[16,8], index: 1, kind: input, shape index: {}]   ;;  %s837_s2 = inlined_call_operand.hbm [shape: bf16[16,128], index: 2, kind: input, shape index: {}]   ;;  %s838_s3 = inlined_call_operand.hbm [shape: bf16[2,128,128], index: 3, kind: input, shape index: {}]   ;;  %s839_s4 = inlined_call_operand.vmem [shape: bf16[8,384], index: 4, kind: input, shape index: {}]   ;;  %s840_s5 = inlined_call_operand.vmem [shape: f32[1,384], index: 5, kind: input, shape index: {}]   ;;  %s841_s6 = inlined_call_operand.hbm [shape: bf16[16,128], index: 6, kind: output, shape index: {}]  }
   0x1   :  { %12 = vsyncpa [#allocation6], 0 }
   0x2   :  { %13 = vsyncpa [#allocation4], 0  ;;  %s695_s21 = smov [#allocation2]   ;;  %s623_s25 = scalar_lea.hbm %s837_s2, 128 }
   0x3   :  { %s23_s22 = sshll.u32 %s695_s21, 4  ;;  %p624_p0 = scmp.ne.s32.totalorder %s837_s2, %s623_s25  ;;  %s24_s22 = int_to_ptr.vmem [resolvable:$true] %s23_s22 }
   0x4   :  { %p627_p1 = scmp.lt.u32.totalorder %s623_s25, %s837_s2 }
   0x6   :  { %p629_p2 = pnand %p627_p1, %p624_p0 }
   0x8   :  { %632 = shalt.err (!%p629_p2)
}
   0x9   :  { %s633_s30 = scalar_lea.vmem %s24_s22, 128  ;;  %p638_p4 = scmp.lt.s32.totalorder %s24_s22, %s24_s22 }
   0xa   :  { %p634_p3 = scmp.ne.s32.totalorder %s24_s22, %s633_s30  ;;  %p639_p5 = scmp.lt.s32.totalorder %s633_s30, %s633_s30 }
   0xc   :  { %p640_p6 = por %p639_p5, %p638_p4 }
   0xe   :  { %p641_p7 = pnand %p640_p6, %p634_p3 }
  0x10   :  { %644 = shalt.err (!%p641_p7)
}
  0x11   :  { %s696_s7 = smov 64   ;;  %s697_s8 = smov 4  }
  0x12   :  { %29 = dma.hbm_to_vmem [thread:$0]  %s837_s2, 128, %s24_s22, [#allocation3], %s696_s7, %s696_s7, %s697_s8  }
  0x13   :  { %s698_s11 = smov [#allocation5]   ;;  %s645_s15 = scalar_lea.hbm %s838_s3, 2048 }
  0x14   :  { %s35_s12 = sshll.u32 %s698_s11, 4  ;;  %p646_p8 = scmp.ne.s32.totalorder %s838_s3, %s645_s15  ;;  %s36_s12 = int_to_ptr.vmem [resolvable:$true] %s35_s12 }
  0x15   :  { %p649_p9 = scmp.lt.u32.totalorder %s645_s15, %s838_s3 }
  0x17   :  { %p651_p10 = pnand %p649_p9, %p646_p8 }
  0x19   :  { %654 = shalt.err (!%p651_p10)
}
  0x1a   :  { %s655_s20 = scalar_lea.vmem %s36_s12, 2048  ;;  %p660_p12 = scmp.lt.s32.totalorder %s36_s12, %s36_s12 }
  0x1b   :  { %p656_p11 = scmp.ne.s32.totalorder %s36_s12, %s655_s20  ;;  %p661_p13 = scmp.lt.s32.totalorder %s655_s20, %s655_s20 }
  0x1d   :  { %p662_p0 = por %p661_p13, %p660_p12 }
  0x1f   :  { %p663_p1 = pnand %p662_p0, %p656_p11 }
  0x21   :  { %666 = shalt.err (!%p663_p1)
}
  0x22   :  { %41 = dma.hbm_to_vmem [thread:$0]  %s838_s3, 2048, %s36_s12, [#allocation6], %s696_s7, %s696_s7, %s697_s8  }
  0x23   :  { %689 = dma.done.wait [#allocation3], 128  }
  0x24   :  { %690 = vsyncadd [#allocation3], 4294967168 }
  0x25   :  { %691 = dma.done.wait [#allocation6], 2048  }
  0x26   :  { %692 = vsyncadd [#allocation6], 4294965248  ;;  %v699_v0 = vmov 0   ;;  %v700_v1 = vmov 0.0   ;;  %vm701_vm0 = vmmov 0   ;;  %v56_v2 = vld [vmem:[%s839_s4] sm:$0xff]  ;;  %v60_v29 = vlaneseq }
  0x27   :  { %129 = vmatprep.mubr.bf16.mxu0 %v699_v0  ;;  %537 = vmatprep.subr.bf16.mxu1 %v700_v1  ;;  %vm87_vm1 = vcmask 1043456   ;;  %v53_v3 = vld [vmem:[%s836_s1] sm:$0xff]  ;;  %v54_v4 = vld [vmem:[%s836_s1 + $0x8] sm:$0xff]  ;;  %v483_v5 = vcombine.high %v56_v2, %v56_v2  ;;  %v482_v6 = vcombine.low %v56_v2, %v56_v2  ;;  %vm83_vm2 = vcmask 64512   ;;  %v607_v14 = vld [vmem:[#allocation5 + $0x8] sm:$0xff]  }
  0x28   :  { %539 = vmatprep.mubr.msk.bf16.mxu1 %vm701_vm0, %v700_v1  ;;  %v55_v8 = vpack.c.bf16 %v54_v4, %v53_v3  ;;  %v605_v9 = vld [vmem:[#allocation2] sm:$0xff]   ;;  %v182_v11 = vld [vmem:[%s835_s0 + $0x8] sm:$0xff]  ;;  %vm192_vm3 = vcmask 130048   ;;  %v608_v15 = vld [vmem:[#allocation5 + $0x10] sm:$0xff]   ;;  %v61_v30 = vshrl.u32 %v60_v29, 7 }
  0x29   :  { %485 = vmatprep.subr.msk.bf16.mxu0 %vm87_vm1, %v483_v5  ;;  %v89_v7 = vsel %vm87_vm1, %v482_v6, 0  ;;  %v181_v10 = vld [vmem:[%s835_s0] sm:$0xff]  ;;  %v606_v12 = vld [vmem:[#allocation5] sm:$0xff]   ;;  %v611_v18 = vld [vmem:[#allocation5 + $0x28] sm:$0xff]  }
  0x2a   :  { %98 = vmatpush1.bf16.msra.mxu0 %v89_v7  ;;  %v183_v13 = vpack.c.bf16 %v182_v11, %v181_v10  ;;  %v609_v16 = vld [vmem:[#allocation5 + $0x18] sm:$0xff]   ;;  %v610_v17 = vld [vmem:[#allocation5 + $0x20] sm:$0xff]   ;;  %v612_v19 = vld [vmem:[#allocation5 + $0x30] sm:$0xff]   ;;  %v62_v31 = vsub.s32 0, %v61_v30  ;;  %v66_v51 = vsub.s32 1, %v61_v30  ;;  %v70_v0 = vsub.s32 2, %v61_v30 }
  0x2b   :  { %543 = vmatprep.subr.bf16.mxu0 %v700_v1  ;;  %v613_v20 = vld [vmem:[#allocation5 + $0x38] sm:$0xff]   ;;  %v614_v21 = vld [vmem:[%s839_s4 + $0x8] ss:$0 sps:$4 sm:$0xff]   ;;  %v616_v24 = vld [vmem:[#allocation5 + $0x48] sm:$0xff]  }
  0x2c   :  { %v95_v22 = vsel %vm87_vm1, %v614_v21, 0  ;;  %v615_v23 = vld [vmem:[#allocation5 + $0x40] sm:$0xff]   ;;  %v617_v25 = vld [vmem:[#allocation5 + $0x50] sm:$0xff]   ;;  %v618_v26 = vld [vmem:[#allocation5 + $0x58] sm:$0xff]  }
  0x2d   :  { %486 = vmatmul.mubr.msk.bf16.vlgmr.msra.gmra.mrb[0].mxu0 %vm83_vm2, %v55_v8  ;;  %538 = vmatpush3.bf16.msra.mxu1 %v95_v22  ;;  %v619_v27 = vld [vmem:[#allocation5 + $0x60] sm:$0xff]   ;;  %v620_v28 = vld [vmem:[#allocation5 + $0x68] sm:$0xff]   ;;  %v58_v32 = vld [vmem:[%s840_s5] sm:$0x7]  ;;  %s702_s5 = smov [#allocation7]  }
  0x2e   :  { %544 = vmatpush3.bf16.msra.mxu0 %v605_v9  ;;  %545 = vmatprep.mubr.msk.bf16.mxu0 %vm701_vm0, %v700_v1  ;;  %v63_v36 = vrot.slane %v58_v32, %v62_v31  ;;  %v621_v49 = vld [vmem:[#allocation5 + $0x70] sm:$0xff]   ;;  %v622_v50 = vld [vmem:[#allocation5 + $0x78] sm:$0xff]   ;;  %v67_v52 = vrot.slane %v58_v32, %v66_v51  ;;  %v71_v2 = vrot.slane %v58_v32, %v70_v0  ;;  %s469_s10 = sshll.u32 %s702_s5, 4  ;;  %s470_s10 = int_to_ptr.vmem [resolvable:$true] %s469_s10 }
  0x2f   :  { %549 = vmatprep.subr.bf16.mxu0 %v700_v1  ;;  %569 = vmatprep.subr.bf16.mxu1 %v700_v1  ;;  %s667_s11 = scalar_lea.vmem %s470_s10, 128  ;;  %p672_p3 = scmp.lt.s32.totalorder %s470_s10, %s470_s10 }
  0x30   :  { %540 = vmatmul.mubr.msk.bf16.vlgmr.msra.gmra.mrb[0].mxu1 %vm83_vm2, %v55_v8  ;;  %p668_p2 = scmp.ne.s32.totalorder %s470_s10, %s667_s11  ;;  %p673_p4 = scmp.lt.s32.totalorder %s667_s11, %s667_s11 }
  0x31   :  { %570 = vmatpush3.bf16.msra.mxu1 %v615_v23  ;;  %585 = vmatprep.mubr.msk.bf16.mxu1 %vm701_vm0, %v700_v1 }
  0x32   :  { %571 = vmatprep.subr.bf16.mxu1 %v700_v1  ;;  %p674_p5 = por %p673_p4, %p672_p3 }
  0x34   :  { %p675_p6 = pnand %p674_p5, %p668_p2 }
  0x35   :  { %546 = vmatmul.mubr.msk.bf16.vlgmr.msra.gmra.mrb[4].mxu0 %vm192_vm3, %v183_v13  ;;  %572 = vmatpush3.bf16.msra.mxu1 %v616_v24 }
  0x36   :  { %550 = vmatpush3.bf16.msra.mxu0 %v606_v12  ;;  %565 = vmatprep.mubr.msk.bf16.mxu0 %vm701_vm0, %v700_v1 }
  0x37   :  { %551 = vmatprep.subr.bf16.mxu0 %v700_v1  ;;  %573 = vmatprep.subr.bf16.mxu1 %v700_v1 }
  0x39   :  { %574 = vmatpush3.bf16.msra.mxu1 %v617_v25 }
  0x3a   :  { %552 = vmatpush3.bf16.msra.mxu0 %v607_v14  ;;  %575 = vmatprep.subr.bf16.mxu1 %v700_v1 }
  0x3b   :  { %553 = vmatprep.subr.bf16.mxu0 %v700_v1 }
  0x3d   :  { %576 = vmatpush3.bf16.msra.mxu1 %v618_v26 }
  0x3e   :  { %554 = vmatpush3.bf16.msra.mxu0 %v608_v15  ;;  %577 = vmatprep.subr.bf16.mxu1 %v700_v1 }
  0x3f   :  { %555 = vmatprep.subr.bf16.mxu0 %v700_v1 }
  0x41   :  { %578 = vmatpush3.bf16.msra.mxu1 %v619_v27 }
  0x42   :  { %556 = vmatpush3.bf16.msra.mxu0 %v609_v16  ;;  %579 = vmatprep.subr.bf16.mxu1 %v700_v1 }
  0x43   :  { %557 = vmatprep.subr.bf16.mxu0 %v700_v1 }
  0x45   :  { %580 = vmatpush3.bf16.msra.mxu1 %v620_v28 }
  0x46   :  { %558 = vmatpush3.bf16.msra.mxu0 %v610_v17  ;;  %581 = vmatprep.subr.bf16.mxu1 %v700_v1 }
  0x47   :  { %559 = vmatprep.subr.bf16.mxu0 %v700_v1 }
  0x49   :  { %582 = vmatpush3.bf16.msra.mxu1 %v621_v49 }
  0x4a   :  { %560 = vmatpush3.bf16.msra.mxu0 %v611_v18  ;;  %583 = vmatprep.subr.bf16.mxu1 %v700_v1 }
  0x4b   :  { %561 = vmatprep.subr.bf16.mxu0 %v700_v1 }
  0x4d   :  { %584 = vmatpush3.bf16.msra.mxu1 %v622_v50 }
  0x4e   :  { %562 = vmatpush3.bf16.msra.mxu0 %v612_v19 }
  0x4f   :  { %563 = vmatprep.subr.bf16.mxu0 %v700_v1 }
  0x52   :  { %564 = vmatpush3.bf16.msra.mxu0 %v613_v20 }
 0x100   :  { %v131_v33 = vpop.f32.mrb[0].mxu0 }
 0x101   :  { %v133_v34 = vpop.f32.mrb[1].mxu0  ;;  %v132_v38 = vadd.f32 %v131_v33, %v63_v36 }
 0x102   :  { %v135_v35 = vpop.f32.mrb[2].mxu0  ;;  %v134_v53 = vadd.f32 %v133_v34, %v67_v52 }
 0x103   :  { %v137_v37 = vpop.f32.mrb[3].mxu0  ;;  %v136_v40 = vadd.f32 %v135_v35, %v63_v36 }
 0x104   :  { %v138_v55 = vadd.f32 %v137_v37, %v67_v52 }
 0x108   :  { %v230_v39 = vpop.f32.mrb[4].mxu0 }
 0x109   :  { %v231_v41 = vadd.f32 %v230_v39, %v132_v38  ;;  %v547_v42 = vpop.f32.mrb[5].mxu0 }
 0x10a   :  { %v233_v43 = vpop.f32.mrb[6].mxu0 }
 0x10b   :  { %v234_v44 = vadd.f32 %v233_v43, %v136_v40  ;;  %v548_v45 = vpop.f32.mrb[7].mxu0  ;;  %v237_v46 = vmax.f32 %v231_v41, 0.0 }
 0x10d   :  { %v238_v47 = vmax.f32 %v234_v44, 0.0 }
 0x10f   :  { %v239_v48 = vpack.c.bf16 %v238_v47, %v237_v46 }
 0x111   :  { %566 = vmatmul.mubr.bf16.vlgmr.msra.gmra.mrb[8].mxu0 %v239_v48 }
 0x1e4   :  { %v338_v54 = vpop.f32.mrb[8].mxu0 }
 0x1e5   :  { %v339_v56 = vadd.f32 %v338_v54, %v134_v53  ;;  %v567_v57 = vpop.f32.mrb[9].mxu0 }
 0x1e6   :  { %v341_v58 = vpop.f32.mrb[10].mxu0 }
 0x1e7   :  { %v342_v59 = vadd.f32 %v341_v58, %v138_v55  ;;  %v568_v60 = vpop.f32.mrb[11].mxu0  ;;  %v345_v61 = vmax.f32 %v339_v56, 0.0 }
 0x1e9   :  { %v346_v62 = vmax.f32 %v342_v59, 0.0 }
 0x1eb   :  { %v347_v63 = vpack.c.bf16 %v346_v62, %v345_v61 }
 0x1ed   :  { %586 = vmatmul.mubr.bf16.vlgmr.msra.gmra.mrb[0].mxu1 %v347_v63 }
 0x2c0   :  { %v447_v3 = vpop.f32.mrb[0].mxu1 }
 0x2c1   :  { %v587_v1 = vpop.f32.mrb[1].mxu1  ;;  %v589_v5 = vadd.f32 %v447_v3, %v71_v2 }
 0x2c2   :  { %v450_v4 = vpop.f32.mrb[2].mxu1 }
 0x2c3   :  { %v590_v6 = vadd.f32 %v450_v4, %v71_v2  ;;  %v588_v7 = vpop.f32.mrb[3].mxu1 }
 0x2c5   :  { %v513_v8 = vpack.c.bf16 %v590_v6, %v589_v5 }
 0x2c7   :  { %514 = vst [vmem:[#allocation7] sm:$0xff] %v513_v8  }
 0x2c8   :  { %678 = shalt.err (!%p675_p6)
}
 0x2c9   :  { %s679_s14 = scalar_lea.hbm %s841_s6, 128 }
 0x2ca   :  { %p680_p7 = scmp.ne.s32.totalorder %s841_s6, %s679_s14  ;;  %p683_p8 = scmp.lt.u32.totalorder %s679_s14, %s841_s6 }
 0x2cc   :  { %p685_p9 = pnand %p683_p8, %p680_p7 }
 0x2ce   :  { %688 = shalt.err (!%p685_p9)
}
 0x2cf   :  { %475 = dma.vmem_to_hbm [thread:$0]  %s470_s10, 128, %s841_s6, [#allocation4], %s696_s7, %s696_s7, %s697_s8  }
 0x2d0   :  { %693 = dma.done.wait [#allocation4], 128  }
 0x2d1   :  { %694 = vsyncadd [#allocation4], 4294967168 }
 0x2d2   :  { %479 = vsyncpa [#allocation3], 1 }
 0x2d3   :  { %480 = vsyncpa [#allocation6], 1 }
 0x2d4   :  { %481 = vsyncpa [#allocation4], 1 }

</bundles_post_ra>
